<compile_context>
chip_gen: v5e
topology: v5e:2x2
jax: 0.10.0
libtpu: 0.0.40
codegen_flags: <defaults>
</compile_context>

<pallas_src>
import functools
import math

import jax
import jax.numpy as jnp
from jax.experimental import pallas as pl
from jax.experimental.pallas import tpu as pltpu

_CONV_K = 30      # nn.Conv2d(1, 1, kernel_size=(1, 30))
_BATCH_PAD = 8    # pad batch to one sublane tile -> all in-kernel slices aligned


def _round_up(x, m):
    return ((x + m - 1) // m) * m


# ---------------------------------------------------------------------------
# Kernel 1: fused term projection + role-flag prefix.
#   out[:, :3] = one_hot(role), out[:, 3:] = feats @ W + b
# (reproduces torch.cat([zeros(size,3), emb], dim=1); out[:, role] = 1.0)
# ---------------------------------------------------------------------------
def _term_embed_kernel(roles_ref, x_ref, w_ref, b_ref, o_ref):
    n = x_ref.shape[0]
    flags = (jax.lax.broadcasted_iota(jnp.int32, (n, 3), 1)
             == roles_ref[...]).astype(jnp.float32)
    emb = (jnp.dot(x_ref[...], w_ref[...], preferred_element_type=jnp.float32)
           + b_ref[...])
    o_ref[...] = jnp.concatenate([flags, emb], axis=1)


def pallas_term_embed(feats, roles, w, b, *, max_tile=256):
    """feats: (N, F) f32, roles: (N, 1) i32 in {0,1,2}, w: (F, D), b: (1, D).
    Returns (N, D + 3)."""
    N, F = feats.shape
    D = w.shape[1]
    tile = min(max_tile, _round_up(N, 8))
    n_pad = _round_up(N, tile)
    if n_pad != N:
        feats = jnp.pad(feats, ((0, n_pad - N), (0, 0)))
        roles = jnp.pad(roles, ((0, n_pad - N), (0, 0)), constant_values=-1)
    out = pl.pallas_call(
        _term_embed_kernel,
        out_shape=jax.ShapeDtypeStruct((n_pad, D + 3), jnp.float32),
        grid_spec=pltpu.PrefetchScalarGridSpec(
            num_scalar_prefetch=0,
            grid=(n_pad // tile,),
            in_specs=[
                pl.BlockSpec((tile, 1), lambda i: (i, 0)),
                pl.BlockSpec((tile, F), lambda i: (i, 0)),
                pl.BlockSpec((F, D), lambda i: (0, 0)),
                pl.BlockSpec((1, D), lambda i: (0, 0)),
            ],
            out_specs=pl.BlockSpec((tile, D + 3), lambda i: (i, 0)),
        ),
        compiler_params=pltpu.CompilerParams(
            dimension_semantics=("parallel",),
            vmem_limit_bytes=32 * 1024 * 1024),
    )(roles, feats, w, b)
    return out[:N]


# ---------------------------------------------------------------------------
# Kernel 2: fused [GRU over T timesteps + Conv2d(1,1,(1,30)) epilogue] for P
# stacked pipelines (tac, gal).  One grid step = one pipeline ("parallel"
# => split across the 2 TensorCores on v7x).
#
# Layout: x is time-major with batch padded to 8 sublanes:
#   x rows = [p, t, b_pad] -> (P*T*8, H).  Every per-timestep access is a
#   static, 8-aligned pl.ds slice; no reshapes or dynamic indices in-kernel.
# ---------------------------------------------------------------------------
def _seq_encoder_kernel(x_ref, wih_ref, whh_ref, bh_ref, bhn_ref, toep_ref,
                        cb_ref, o_ref, gi_ref, hs_ref, *, seq_len, batch_pad):
    H = x_ref.shape[-1]
    wih = wih_ref[0]      # (H, 3H)
    whh = whh_ref[0]      # (H, 3H)
    bh = bh_ref[0]        # (1, 3H)  = b_ih + [b_hh_r, b_hh_z, 0]
    bhn = bhn_ref[0]      # (1, H)   = b_hh_n

    # (1) hoisted input projection: all timesteps in ONE MXU matmul.
    gi_ref[...] = (jnp.dot(x_ref[...], wih, preferred_element_type=jnp.float32)
                   + bh)

    # (2) serial recurrence (PyTorch gate order r, z, n); only h @ W_hh per step.
    h = jnp.zeros((batch_pad, H), jnp.float32)
    for t in range(seq_len):                      # static, fully unrolled
        row = t * batch_pad
        g = gi_ref[pl.ds(row, batch_pad), :]      # (8, 3H)
        gh = jnp.dot(h, whh, preferred_element_type=jnp.float32)
        r = jax.nn.sigmoid(g[:, :H] + gh[:, :H])
        z = jax.nn.sigmoid(g[:, H:2 * H] + gh[:, H:2 * H])
        n = jnp.tanh(g[:, 2 * H:] + r * (gh[:, 2 * H:] + bhn))
        h = (1.0 - z) * n + z * h
        hs_ref[pl.ds(row, batch_pad), :] = h

    # (3) Conv2d(1,1,(1,30)) epilogue expressed as a Toeplitz matmul over all
    #     (T*8) rows at once, plus the scalar conv bias.
    o_ref[...] = (jnp.dot(hs_ref[...], toep_ref[0],
                          preferred_element_type=jnp.float32) + cb_ref[0])


def pallas_seq_encode(x, wih, whh, bh, bhn, toep, cb, *, num_pipelines,
                      seq_len, batch_pad):
    """x: (P*T*8, H); params stacked with leading P. Returns (P*T*8, Wout)."""
    P, T, BP = num_pipelines, seq_len, batch_pad
    H = x.shape[-1]
    G = 3 * H
    Wout = toep.shape[-1]
    kern = functools.partial(_seq_encoder_kernel, seq_len=T, batch_pad=BP)
    return pl.pallas_call(
        kern,
        out_shape=jax.ShapeDtypeStruct((P * T * BP, Wout), jnp.float32),
        grid_spec=pltpu.PrefetchScalarGridSpec(
            num_scalar_prefetch=0,
            grid=(P,),
            in_specs=[
                pl.BlockSpec((T * BP, H), lambda p: (p, 0)),
                pl.BlockSpec((1, H, G), lambda p: (p, 0, 0)),
                pl.BlockSpec((1, H, G), lambda p: (p, 0, 0)),
                pl.BlockSpec((1, 1, G), lambda p: (p, 0, 0)),
                pl.BlockSpec((1, 1, H), lambda p: (p, 0, 0)),
                pl.BlockSpec((1, H, Wout), lambda p: (p, 0, 0)),
                pl.BlockSpec((1, 1, 1), lambda p: (p, 0, 0)),
            ],
            out_specs=pl.BlockSpec((T * BP, Wout), lambda p: (p, 0)),
            scratch_shapes=[
                pltpu.VMEM((T * BP, G), jnp.float32),   # hoisted input gates
                pltpu.VMEM((T * BP, H), jnp.float32),   # full hidden sequence
            ],
        ),
        compiler_params=pltpu.CompilerParams(
            dimension_semantics=("parallel",),
            vmem_limit_bytes=32 * 1024 * 1024),
    )(x, wih, whh, bh, bhn, toep, cb)


# ---------------------------------------------------------------------------
# Prover (JAX side): parameter setup + forward composition (glue).
# ---------------------------------------------------------------------------
class ProverPallas:
    def __init__(self, key, *, num_tactics=50, tac_embedding=32,
                 num_gal=40, gal_embedding=32,
                 term_feat_dim=16, term_embedding=32):
        # TODO(synk): support unequal tac/gal widths by padding to a common H.
        assert tac_embedding == gal_embedding
        assert tac_embedding >= _CONV_K
        H = tac_embedding
        G = 3 * H
        Wout = H - _CONV_K + 1
        self.hidden = H
        self.conv_out = Wout

        ks = list(jax.random.split(key, 16))

        def unif(k, shape, fan):
            s = 1.0 / math.sqrt(fan)
            return jax.random.uniform(k, shape, jnp.float32, -s, s)

        # Embedding(num_tactics, tac_embedding, padding_idx=0)
        self.tactic_embedding_table = jax.random.normal(
            ks[0], (num_tactics, H), jnp.float32).at[0].set(0.0)
        # Embedding(num_gal, gal_embedding, padding_idx=0)
        self.gal_embedding_table = jax.random.normal(
            ks[1], (num_gal, H), jnp.float32).at[0].set(0.0)

        # nn.GRU(H, H, 1, batch_first=True) -- weights stored pre-transposed (H, 3H)
        def gru(k0, k1, k2, k3):
            return (unif(k0, (H, G), H), unif(k1, (H, G), H),
                    unif(k2, (G,), H), unif(k3, (G,), H))

        tac_gru = gru(ks[2], ks[3], ks[4], ks[5])
        gal_gru = gru(ks[6], ks[7], ks[8], ks[9])

        # nn.Conv2d(1, 1, kernel_size=(1, 30)) -- 30 taps + scalar bias.
        tac_cw, tac_cb = unif(ks[10], (_CONV_K,), _CONV_K), unif(ks[11], (1, 1), _CONV_K)
        gal_cw, gal_cb = unif(ks[12], (_CONV_K,), _CONV_K), unif(ks[13], (1, 1), _CONV_K)

        def toeplitz(w):
            t = jnp.zeros((H, Wout), jnp.float32)
            for j in range(Wout):
                t = t.at[j:j + _CONV_K, j].set(w)
            return t

        def fuse(gru_p, cw, cb):
            wih, whh, bih, bhh = gru_p
            # fold b_hh for the r,z gates into the hoisted bias; the n gate keeps
            # b_hh separate because of the reset gating (exact GRU equivalence).
            bh = bih + jnp.concatenate([bhh[:2 * H], jnp.zeros((H,), jnp.float32)])
            return (wih, whh, bh.reshape(1, G), bhh[2 * H:].reshape(1, H),
                    toeplitz(cw), cb)

        tac_f = fuse(tac_gru, tac_cw, tac_cb)
        gal_f = fuse(gal_gru, gal_cw, gal_cb)
        (self.seq_wih, self.seq_whh, self.seq_bh, self.seq_bhn,
         self.seq_toep, self.seq_cb) = [
            jnp.stack([a, b]) for a, b in zip(tac_f, gal_f)]

        # TODO(synk): TermEncoder (tree encoder) is external; stand-in = a dense
        # projection of per-AST feature vectors run through the fused term kernel.
        self.term_w = unif(ks[14], (term_feat_dim, term_embedding), term_feat_dim)
        self.term_b = unif(ks[15], (1, term_embedding), term_feat_dim)

    # ------------------------------------------------------------------ #
    def _encode_sequences(self, ids_list, which):
        """ids_list[i]: (B, T) int ids; which[i]: 0=tactic pipeline, 1=gal."""
        P = len(ids_list)
        B, T = ids_list[0].shape
        assert B <= _BATCH_PAD
        tables = (self.tactic_embedding_table, self.gal_embedding_table)
        xs = []
        for ids, w in zip(ids_list, which):
            e = jnp.take(tables[w], ids.T, axis=0)                  # (T, B, H) time-major
            e = jnp.pad(e, ((0, 0), (0, _BATCH_PAD - B), (0, 0)))   # (T, 8, H)
            xs.append(e.reshape(T * _BATCH_PAD, self.hidden))
        x_stack = jnp.concatenate(xs, axis=0)                       # (P*T*8, H)
        sel = jnp.asarray(which, dtype=jnp.int32)
        out = pallas_seq_encode(
            x_stack,
            self.seq_wih[sel], self.seq_whh[sel], self.seq_bh[sel],
            self.seq_bhn[sel], self.seq_toep[sel], self.seq_cb[sel],
            num_pipelines=P, seq_len=T, batch_pad=_BATCH_PAD)
        out = out.reshape(P, T, _BATCH_PAD, self.conv_out)[:, :, :B, :]
        out = jnp.transpose(out, (0, 2, 1, 3))                      # (P, B, T, Wout)
        return [out[i] for i in range(P)]

    # ------------------------------------------------------------------ #
    def embed_terms(self, environment, local_context, goal_feats,
                    tok_ids=None, gal_ids=None):
        # environment / local_context: list (per batch) of (n_i, F) feature arrays
        # goal_feats: (B, F)
        B = len(environment)
        env_sizes = [int(e.shape[0]) for e in environment]
        ctx_sizes = [int(c.shape[0]) for c in local_context]
        all_feats = jnp.concatenate(list(environment) + list(local_context)
                                    + [goal_feats], axis=0)
        roles = jnp.concatenate([
            jnp.zeros((sum(env_sizes), 1), jnp.int32),   # env rows  -> flag col 0
            jnp.ones((sum(ctx_sizes), 1), jnp.int32),    # ctx rows  -> flag col 1
            jnp.full((B, 1), 2, jnp.int32)], axis=0)     # goal rows -> flag col 2
        all_emb = pallas_term_embed(all_feats, roles, self.term_w, self.term_b)

        environment_embeddings, context_embeddings = [], []
        j = 0
        for s in env_sizes:
            environment_embeddings.append(all_emb[j:j + s])
            j += s
        for s in ctx_sizes:
            context_embeddings.append(all_emb[j:j + s])
            j += s
        goal_embeddings = all_emb[j:j + B]

        if tok_ids is not None and gal_ids is not None:
            # TODO(synk): Seq_data_process + AFPNet (Tok/Gal encoders) are external;
            # stand-in = Embedding -> GRU -> Conv2d(1,1,(1,30)), fused in one kernel.
            # NOTE: the (1,30) conv is applied along the hidden/feature axis
            # (last spatial axis of the NCHW input), as in rev 1.
            tac_seq, gal_seq = self._encode_sequences([tok_ids, gal_ids], [0, 1])
            return (environment_embeddings, context_embeddings, goal_embeddings,
                    tac_seq, gal_seq)
        if tok_ids is not None:
            _ = self._encode_sequences([tok_ids], [0])   # parity with reference control flow
        return environment_embeddings, context_embeddings, goal_embeddings

    # ------------------------------------------------------------------ #
    def forward(self, environment, local_context, goal_feats, tok_ids, gal_ids):
        (env_emb, ctx_emb, goal_emb, seq_emb, gal_emb) = self.embed_terms(
            environment, local_context, goal_feats, tok_ids, gal_ids)
        environment_out = [{'embeddings': env_emb[i]} for i in range(len(environment))]
        local_context_out = [{'embeddings': ctx_emb[i]} for i in range(len(local_context))]
        goal_out = {'embeddings': goal_emb}
        # TODO(synk): TacticDecoder is external; stand-in "loss" is a cheap
        # deterministic scalar over all produced embeddings (glue, not hot path).
        loss = (jnp.mean(goal_emb) + jnp.mean(seq_emb) + jnp.mean(gal_emb)
                + sum(jnp.mean(e) for e in env_emb)
                + sum(jnp.mean(e) for e in ctx_emb))
        return (environment_out, local_context_out, goal_out, seq_emb, gal_emb), loss


# ---------------------------------------------------------------------------
if __name__ == "__main__":
    key = jax.random.PRNGKey(0)
    k_model, k_env, k_ctx, k_goal, k_tok, k_gal = jax.random.split(key, 6)

    B = 2
    F = 16          # synthetic per-AST feature dim
    T = 40          # sequence length

    prover = ProverPallas(k_model, term_feat_dim=F)

    env_sizes = [3, 2]
    ctx_sizes = [2, 4]
    environment = [
        jax.random.normal(jax.random.fold_in(k_env, i), (s, F), jnp.float32)
        for i, s in enumerate(env_sizes)
    ]
    local_context = [
        jax.random.normal(jax.random.fold_in(k_ctx, i), (s, F), jnp.float32)
        for i, s in enumerate(ctx_sizes)
    ]
    goal_feats = jax.random.normal(k_goal, (B, F), jnp.float32)
    tok_ids = jax.random.randint(k_tok, (B, T), 0, 50)
    gal_ids = jax.random.randint(k_gal, (B, T), 0, 40)

    (env_out, ctx_out, goal_out, seq_emb, gal_emb), loss = prover.forward(
        environment, local_context, goal_feats, tok_ids, gal_ids)

    jax.block_until_ready(loss)
    jax.block_until_ready(seq_emb)
    jax.block_until_ready(goal_out['embeddings'])
    print("KERNEL_OK")
</pallas_src>

<mosaic_0001>
module attributes {stable_mosaic.version = 11 : i64} {
  func.func @_term_embed_kernel(%arg0: i32, %arg1: memref<16x1xi32, #tpu.memory_space<vmem>>, %arg2: memref<16x16xf32, #tpu.memory_space<vmem>>, %arg3: memref<16x32xf32, #tpu.memory_space<vmem>>, %arg4: memref<1x32xf32, #tpu.memory_space<vmem>>, %arg5: memref<16x35xf32, #tpu.memory_space<vmem>>) attributes {dimension_semantics = [#tpu.dimension_semantics<parallel>], iteration_bounds = array<i64: 1>, scalar_prefetch = 0 : i64, scratch_operands = 0 : i64, tpu.core_type = #tpu.core_type<tc>, window_params = [{transform_indices = @transform_0, window_bounds = array<i64: 16, 1>}, {transform_indices = @transform_1, window_bounds = array<i64: 16, 16>}, {pipeline_mode = #tpu.pipeline_mode<synchronous>, transform_indices = @transform_2, window_bounds = array<i64: 16, 32>}, {pipeline_mode = #tpu.pipeline_mode<synchronous>, transform_indices = @transform_3, window_bounds = array<i64: 1, 32>}, {transform_indices = @transform_4, window_bounds = array<i64: 16, 35>}]} {
    %0 = tpu.iota {dimensions = array<i32: 1>} : vector<16x3xi32>
    %c0 = arith.constant 0 : index
    %c0_0 = arith.constant 0 : index
    %1 = vector.load %arg1[%c0, %c0_0] : memref<16x1xi32, #tpu.memory_space<vmem>>, vector<16x1xi32>
    %2 = vector.broadcast %1 : vector<16x1xi32> to vector<16x3xi32>
    %3 = arith.cmpi eq, %0, %2 : vector<16x3xi32>
    %4 = arith.extui %3 : vector<16x3xi1> to vector<16x3xi32>
    %5 = arith.sitofp %4 : vector<16x3xi32> to vector<16x3xf32>
    %c0_1 = arith.constant 0 : index
    %c0_2 = arith.constant 0 : index
    %6 = vector.load %arg2[%c0_1, %c0_2] : memref<16x16xf32, #tpu.memory_space<vmem>>, vector<16x16xf32>
    %c0_3 = arith.constant 0 : index
    %c0_4 = arith.constant 0 : index
    %7 = vector.load %arg3[%c0_3, %c0_4] : memref<16x32xf32, #tpu.memory_space<vmem>>, vector<16x32xf32>
    %cst = arith.constant dense<0.000000e+00> : vector<16x32xf32>
    %8 = tpu.matmul %6, %7, %cst {dimension_numbers = #tpu.dot_dimension_numbers<[1], [0], [0], [1], [0, 0, 1, 1], [], []>} : vector<16x16xf32>, vector<16x32xf32>, vector<16x32xf32> -> vector<16x32xf32>
    %c0_5 = arith.constant 0 : index
    %c0_6 = arith.constant 0 : index
    %9 = vector.load %arg4[%c0_5, %c0_6] : memref<1x32xf32, #tpu.memory_space<vmem>>, vector<1x32xf32>
    %10 = vector.broadcast %9 : vector<1x32xf32> to vector<16x32xf32>
    %11 = arith.addf %8, %10 : vector<16x32xf32>
    %12 = tpu.concatenate %5, %11 in 1 : vector<16x3xf32>, vector<16x32xf32> -> vector<16x35xf32>
    %c0_7 = arith.constant 0 : index
    %c0_8 = arith.constant 0 : index
    %13 = vector.load %arg5[%c0_7, %c0_8] : memref<16x35xf32, #tpu.memory_space<vmem>>, vector<16x35xf32>
    tpu.vector_store %arg5[%c0_7, %c0_8], %12 {strides = array<i32>} : memref<16x35xf32, #tpu.memory_space<vmem>>, vector<16x35xf32>,
    return
  }
  func.func @transform_0(%arg0: i32) -> (i32, i32) {
    %c0_i32 = arith.constant 0 : i32
    %c0_i32_0 = arith.constant 0 : i32
    return %arg0, %c0_i32 : i32, i32
  }
  func.func @transform_1(%arg0: i32) -> (i32, i32) {
    %c0_i32 = arith.constant 0 : i32
    %c0_i32_0 = arith.constant 0 : i32
    return %arg0, %c0_i32 : i32, i32
  }
  func.func @transform_2(%arg0: i32) -> (i32, i32) {
    %c0_i32 = arith.constant 0 : i32
    %c0_i32_0 = arith.constant 0 : i32
    %c0_i32_1 = arith.constant 0 : i32
    return %c0_i32, %c0_i32_0 : i32, i32
  }
  func.func @transform_3(%arg0: i32) -> (i32, i32) {
    %c0_i32 = arith.constant 0 : i32
    %c0_i32_0 = arith.constant 0 : i32
    %c0_i32_1 = arith.constant 0 : i32
    return %c0_i32, %c0_i32_0 : i32, i32
  }
  func.func @transform_4(%arg0: i32) -> (i32, i32) {
    %c0_i32 = arith.constant 0 : i32
    %c0_i32_0 = arith.constant 0 : i32
    return %arg0, %c0_i32 : i32, i32
  }
}

</mosaic_0001>

<bundles_post_ra>
// kernel: tpu_custom_call.1
= control target key start
LH: loop header
LB: loop body
LE: loop exit
PB: predicated region body
PF: predicated region fallthrough
CT: control target
= control target key end

     0   :  { %9 = vsyncpa [#allocation3], 0  ;;  %s247_s0 = inlined_call_operand.vmem [shape: s32[16,1], index: 0, kind: input, shape index: {}]   ;;  %s248_s1 = inlined_call_operand.vmem [shape: f32[16,16], index: 1, kind: input, shape index: {}]   ;;  %s249_s2 = inlined_call_operand.hbm [shape: f32[16,32], index: 2, kind: input, shape index: {}]   ;;  %s250_s3 = inlined_call_operand.vmem [shape: f32[1,32], index: 3, kind: input, shape index: {}]   ;;  %s251_s4 = inlined_call_operand.hbm [shape: f32[16,35], index: 4, kind: output, shape index: {}]  }
   0x1   :  { %10 = vsyncpa [#allocation4], 0  ;;  %s19_s17 = sshll.u32 %s249_s2, 4  ;;  %s188_s18 = smov [#allocation2]   ;;  %s20_s17 = int_to_ptr.hbm [resolvable:$true] %s19_s17 }
   0x2   :  { %s21_s19 = sshll.u32 %s188_s18, 4  ;;  %s189_s20 = smov 128   ;;  %s22_s19 = int_to_ptr.vmem [resolvable:$true] %s21_s19 }
   0x3   :  { %s190_s21 = smov 8  }
   0x4   :  { %27 = dma.hbm_to_vmem [thread:$0]  %s20_s17, 256, %s22_s19, [#allocation3], %s189_s20, %s189_s20, %s190_s21  }
   0x5   :  { %184 = dma.done.wait [#allocation3], 256  }
   0x6   :  { %185 = vsyncadd [#allocation3], 4294967040  ;;  %v191_v0 = vmov 0   ;;  %v53_v1 = vld [vmem:[#allocation2 + $0x8] sm:$0xff]  ;;  %v52_v2 = vld [vmem:[#allocation2] sm:$0xff]  ;;  %vm58_vm0 = vcmask 130048   ;;  %v34_v12 = vlaneseq }
   0x7   :  { %134 = vset.pattern.permute.xlu0 %v191_v0  ;;  %v50_v3 = vld [vmem:[%s248_s1] sm:$0xff]  ;;  %79 = vmatpush.msra.mxu0 %v53_v1  ;;  %v51_v4 = vld [vmem:[%s248_s1 + $0x8] sm:$0xff]  ;;  %s192_s1 = smov 3   ;;  %v193_v15 = vmov 0.0   ;;  %vm96_vm2 = vcmask 23552   ;;  %vm99_vm3 = vcmask 285696  }
   0x8   :  { %125 = vmatpush.msra.mxu1 %v53_v1  ;;  %v36_v5 = vld [vmem:[%s247_s0] sm:$0xff]  ;;  %v37_v6 = vld [vmem:[%s247_s0 + $0x8] sm:$0xff]  ;;  %v35_v13 = vand.u32 127, %v34_v12  ;;  %s194_s0 = smov [#allocation5]   ;;  %s108_s7 = sshll.u32 %s251_s4, 4  ;;  %s109_s7 = int_to_ptr.hbm [resolvable:$true] %s108_s7 }
   0x9   :  { %39 = vperm.xlu0 %134, %v36_v5   ;;  %80 = vmatpush.msra.mxu0 %v52_v2  ;;  %v135_v7 = vld [vmem:[%s250_s3] ss:$0 sm:$0xff]  ;;  %s106_s3 = sshll.u32 %s194_s0, 4  ;;  %s107_s3 = int_to_ptr.vmem [resolvable:$true] %s106_s3 }
   0xa   :  { %126 = vmatpush.msra.mxu1 %v52_v2  ;;  %123 = vmatmul.msk.f32.vlgmr.msra.gmra.mxu0 %vm58_vm0, %v50_v3 }
   0xb   :  { %124 = vmatmul.msk.f32.vlgmr.msra.gmra.mxu1 %vm58_vm0, %v51_v4 }
  0x11   :  { %42 = vperm.xlu0 %134, %v37_v6  }
  0x7b   :  { %v40_v14 = vpop.permute.xlu0 %39 }
  0x7c   :  { %vm44_vm1 = vcmp.eq.s32.totalorder %v35_v13, %v40_v14 }
  0x7d   :  { %v121_v16 = vsel %vm44_vm1, 1.0, %v193_v15 }
  0x83   :  { %v43_v19 = vpop.permute.xlu0 %42 }
  0x84   :  { %vm45_vm4 = vcmp.eq.s32.totalorder %v35_v13, %v43_v19 }
  0x85   :  { %v122_v20 = vsel %vm45_vm4, 1.0, %v193_v15 }
  0x87   :  { %v82_v8 = vpop.f32.mrf.mxu0 }
  0x88   :  { %v83_v9 = vadd.f32 %v135_v7, %v82_v8  ;;  %v85_v10 = vpop.f32.mrf.mxu1 }
  0x89   :  { %v86_v11 = vadd.f32 %v135_v7, %v85_v10 }
  0x8a   :  { %90 = vrot.lane.b32.xlu1 %v83_v9, %s192_s1 }
  0x92   :  { %92 = vrot.lane.b32.xlu1 %v86_v11, %s192_s1 }
  0xfc   :  { %v91_v17 = vpop.permute.xlu1 %90 }
  0xfd   :  { %v97_v18 = vsel %vm96_vm2, %v121_v16, %v91_v17 }
  0xfe   :  { %100 = vst.msk [vmem:[#allocation5] sm:$0xff] %vm99_vm3, %v97_v18 }
 0x104   :  { %v93_v21 = vpop.permute.xlu1 %92 }
 0x105   :  { %v98_v22 = vsel %vm96_vm2, %v122_v20, %v93_v21 }
 0x106   :  { %101 = vst.msk [vmem:[#allocation5 + $0x8] sm:$0xff] %vm99_vm3, %v98_v22 }
 0x107   :  { %114 = dma.vmem_to_hbm [thread:$0]  %s107_s3, 256, %s109_s7, [#allocation4], %s189_s20, %s189_s20, %s190_s21  }
 0x108   :  { %186 = dma.done.wait [#allocation4], 256  }
 0x109   :  { %187 = vsyncadd [#allocation4], 4294967040 }
 0x10a   :  { %119 = vsyncpa [#allocation3], 1 }
 0x10b   :  { %120 = vsyncpa [#allocation4], 1 }

</bundles_post_ra>
